<compile_context>
chip_gen: v7x
topology: tpu7x:2x2x1
jax: 0.10.0
libtpu: 0.0.40
codegen_flags: <defaults>
</compile_context>

<pallas_src>
import math

import jax
import jax.numpy as jnp
from jax.experimental import pallas as pl
from jax.experimental.pallas import tpu as pltpu


def _round_up(x, m):
    return ((x + m - 1) // m) * m


def _round_down(x, m):
    return (x // m) * m


def _value_head_kernel(x_ref, w_ref, b_ref, o_ref):
    # x_ref: (tm, H) bf16 VMEM (streamed)   w_ref: (H, 1) bf16 VMEM (resident)
    # b_ref: (1,)    f32  SMEM              o_ref: (tm, 1) bf16 VMEM
    acc = jnp.dot(x_ref[...], w_ref[...], preferred_element_type=jnp.float32)  # MXU, f32 acc
    o_ref[...] = (acc + b_ref[0]).astype(o_ref.dtype)


def _vmem_capacity_bytes():
    # Per-TensorCore VMEM capacity; fall back to the smallest (v7x: 64 MiB) if the
    # query is unavailable so the tile sizing stays safe everywhere.
    try:
        cap = int(pltpu.get_tpu_info().vmem_capacity_bytes)
        if cap > 0:
            return cap
    except Exception:
        pass
    return 64 << 20


def value_head_forward(x, weight, bias, *, tm=2048):
    """Pallas equivalent of `self.fc(x).squeeze(-1)`.

    x:      (..., H) bf16
    weight: (1, H)   bf16   (PyTorch nn.Linear weight layout: (out_features, in_features))
    bias:   (1,)     bf16
    returns (...,)   bf16
    """
    lead_shape = x.shape[:-1]
    H = x.shape[-1]
    M = math.prod(lead_shape)

    if M == 0:
        return jnp.zeros(lead_shape, x.dtype)

    x2 = x.reshape(M, H)                        # collapse leading dims (no copy)
    w = weight.reshape(H, 1)                    # (H, 1) column for the MXU matmul
    b = bias.astype(jnp.float32).reshape(1)     # f32 scalar bias for SMEM

    itemsize = jnp.dtype(x.dtype).itemsize

    # ---- per-generation VMEM budgeting --------------------------------------------
    vmem_cap = _vmem_capacity_bytes()
    # Leave >=16 MiB Mosaic headroom and never request more than 3/4 of capacity:
    # ~96 MiB on v5e/v6e, ~48 MiB on v7x.
    vmem_target = max(16 << 20, min(vmem_cap - (16 << 20), (vmem_cap * 3) // 4))

    # Resident weight: lane-padded (H,1)->(H,128), budgeted double-buffered since Pallas
    # double-buffers inputs by default even with a constant index_map.
    w_budget = 2 * _round_up(H, 16) * 128 * jnp.dtype(w.dtype).itemsize
    slack = 4 << 20

    # Per-row VMEM cost: double-buffered x row + double-buffered lane-padded output row.
    per_row_bytes = 2 * H * itemsize + 2 * 128 * itemsize
    avail = max(vmem_target - w_budget - slack, 16 * per_row_bytes)
    tm_cap = max(16, _round_down(avail // per_row_bytes, 16))

    tm = max(16, min(tm, tm_cap))
    # Ensure >=2 row tiles when M allows it, so the "parallel" grid axis can be sharded
    # across both v7x TensorCores (no-op on single-TC v5e/v6e); also clamps tiny inputs.
    tm = min(tm, max(16, _round_up(pl.cdiv(M, 2), 16)))

    # Ragged edge: no padding copy. The last block may read out-of-bounds rows (garbage);
    # those rows' outputs are never written back, and rows are independent, so this is safe.
    n_tiles = pl.cdiv(M, tm)

    # Explicit VMEM limit from the actual footprint so the large tile compiles with
    # double buffering, clipped to the per-generation target.
    vmem_limit = 2 * tm * H * itemsize + 2 * tm * 128 * itemsize + w_budget + slack
    vmem_limit = int(min(max(vmem_limit, 16 << 20), vmem_target))

    cost = pl.CostEstimate(
        flops=2 * M * H,
        transcendentals=0,
        bytes_accessed=M * H * itemsize + H * itemsize + M * itemsize,
    )

    out = pl.pallas_call(
        _value_head_kernel,
        out_shape=jax.ShapeDtypeStruct((M, 1), x.dtype),
        grid_spec=pltpu.PrefetchScalarGridSpec(
            num_scalar_prefetch=0,
            grid=(n_tiles,),
            in_specs=[
                pl.BlockSpec((tm, H), lambda i: (i, 0)),             # x tile (streamed)
                pl.BlockSpec((H, 1), lambda i: (0, 0)),              # weight (resident)
                pl.BlockSpec(memory_space=pltpu.MemorySpace.SMEM),   # bias scalar
            ],
            out_specs=pl.BlockSpec((tm, 1), lambda i: (i, 0)),
        ),
        compiler_params=pltpu.CompilerParams(
            dimension_semantics=("parallel",),   # shards row tiles across TCs on v7x
            vmem_limit_bytes=vmem_limit,
        ),
        cost_estimate=cost,
    )(x2, w, b)

    return out.reshape(lead_shape)               # (M,1) -> leading shape == squeeze(-1)


def init_value_head_params(key, hidden_size, dtype=jnp.bfloat16):
    # Matches nn.Linear default init: U(-1/sqrt(fan_in), 1/sqrt(fan_in))
    k_w, k_b = jax.random.split(key)
    bound = 1.0 / math.sqrt(hidden_size)
    weight = jax.random.uniform(k_w, (1, hidden_size), jnp.float32, -bound, bound).astype(dtype)
    bias = jax.random.uniform(k_b, (1,), jnp.float32, -bound, bound).astype(dtype)
    return weight, bias


def _reference(x, weight, bias):
    # Pure-JAX reference with the same semantics as fc(x).squeeze(-1)
    y = (
        jnp.dot(x.astype(jnp.float32), weight.astype(jnp.float32).T)
        + bias.astype(jnp.float32)
    )
    return y.astype(x.dtype).squeeze(-1)


# TODO(synk): save()/load() checkpoint I/O from the PyTorch module is host-side
# state management and has no Pallas kernel equivalent.

if __name__ == "__main__":
    key = jax.random.PRNGKey(0)
    k_x, k_p, k_x2 = jax.random.split(key, 3)

    batch, seq, hidden = 2, 8, 32
    x = jax.random.normal(k_x, (batch, seq, hidden), jnp.float32).astype(jnp.bfloat16)
    weight, bias = init_value_head_params(k_p, hidden)

    out = value_head_forward(x, weight, bias)
    out = jax.block_until_ready(out)

    ref = _reference(x, weight, bias)
    assert out.shape == (batch, seq)
    assert out.dtype == jnp.bfloat16
    assert jnp.allclose(out.astype(jnp.float32), ref.astype(jnp.float32), atol=2e-2, rtol=2e-2)

    # Second check: row count NOT a multiple of the tile, exercising the (pad-free)
    # partial edge-block path.
    b2, s2 = 3, 5
    x_odd = jax.random.normal(k_x2, (b2, s2, hidden), jnp.float32).astype(jnp.bfloat16)
    out_odd = jax.block_until_ready(value_head_forward(x_odd, weight, bias))
    ref_odd = _reference(x_odd, weight, bias)
    assert out_odd.shape == (b2, s2)
    assert jnp.allclose(out_odd.astype(jnp.float32), ref_odd.astype(jnp.float32),
                        atol=2e-2, rtol=2e-2)

    print("KERNEL_OK")
</pallas_src>

<mosaic_0001>
module attributes {stable_mosaic.version = 11 : i64} {
  func.func @_value_head_kernel(%arg0: i32, %arg1: memref<16x32xbf16, #tpu.memory_space<vmem>>, %arg2: memref<32x1xbf16, #tpu.memory_space<vmem>>, %arg3: memref<1xf32, #tpu.memory_space<smem>>, %arg4: memref<16x1xbf16, #tpu.memory_space<vmem>>) attributes {dimension_semantics = [#tpu.dimension_semantics<parallel>], iteration_bounds = array<i64: 1>, scalar_prefetch = 0 : i64, scratch_operands = 0 : i64, tpu.core_type = #tpu.core_type<tc>, window_params = [{transform_indices = @transform_0, window_bounds = array<i64: 16, 32>}, {pipeline_mode = #tpu.pipeline_mode<synchronous>, transform_indices = @transform_1, window_bounds = array<i64: 32, 1>}, {transform_indices = @transform_2, window_bounds = array<i64: 1>}, {transform_indices = @transform_3, window_bounds = array<i64: 16, 1>}]} {
    %c0 = arith.constant 0 : index
    %c0_0 = arith.constant 0 : index
    %0 = vector.load %arg1[%c0, %c0_0] : memref<16x32xbf16, #tpu.memory_space<vmem>>, vector<16x32xbf16>
    %c0_1 = arith.constant 0 : index
    %c0_2 = arith.constant 0 : index
    %1 = vector.load %arg2[%c0_1, %c0_2] : memref<32x1xbf16, #tpu.memory_space<vmem>>, vector<32x1xbf16>
    %cst = arith.constant dense<0.000000e+00> : vector<16x1xf32>
    %2 = tpu.matmul %0, %1, %cst {dimension_numbers = #tpu.dot_dimension_numbers<[1], [0], [0], [1], [0, 0, 1, 1], [], []>} : vector<16x32xbf16>, vector<32x1xbf16>, vector<16x1xf32> -> vector<16x1xf32>
    %c0_3 = arith.constant 0 : index
    %3 = memref.load %arg3[%c0_3] : memref<1xf32, #tpu.memory_space<smem>>
    %4 = vector.broadcast %3 : f32 to vector<16x1xf32>
    %5 = arith.addf %2, %4 : vector<16x1xf32>
    %6 = arith.truncf %5 : vector<16x1xf32> to vector<16x1xbf16>
    %c0_4 = arith.constant 0 : index
    %c0_5 = arith.constant 0 : index
    %7 = vector.load %arg4[%c0_4, %c0_5] : memref<16x1xbf16, #tpu.memory_space<vmem>>, vector<16x1xbf16>
    tpu.vector_store %arg4[%c0_4, %c0_5], %6 {strides = array<i32>} : memref<16x1xbf16, #tpu.memory_space<vmem>>, vector<16x1xbf16>,
    return
  }
  func.func @transform_0(%arg0: i32) -> (i32, i32) {
    %c0_i32 = arith.constant 0 : i32
    %c0_i32_0 = arith.constant 0 : i32
    return %arg0, %c0_i32 : i32, i32
  }
  func.func @transform_1(%arg0: i32) -> (i32, i32) {
    %c0_i32 = arith.constant 0 : i32
    %c0_i32_0 = arith.constant 0 : i32
    %c0_i32_1 = arith.constant 0 : i32
    return %c0_i32, %c0_i32_0 : i32, i32
  }
  func.func @transform_2(%arg0: i32) -> i32 {
    %c0_i32 = arith.constant 0 : i32
    %c0_i32_0 = arith.constant 0 : i32
    return %c0_i32 : i32
  }
  func.func @transform_3(%arg0: i32) -> (i32, i32) {
    %c0_i32 = arith.constant 0 : i32
    %c0_i32_0 = arith.constant 0 : i32
    return %arg0, %c0_i32 : i32, i32
  }
}

</mosaic_0001>

<bundles_post_ra>
// kernel: tpu_custom_call.1
= control target key start
LH: loop header
LB: loop body
LE: loop exit
PB: predicated region body
PF: predicated region fallthrough
CT: control target
= control target key end

     0   :  { %v125_v0 = vmov 0.0   ;;  %vm126_vm0 = vmmov 0   ;;  %vm41_vm1 = vcmask 261120   ;;  %vm94_vm2 = vcmask 3072   ;;  %s165_s1 = inlined_call_operand.vmem [shape: bf16[32,1], index: 1, kind: input, shape index: {}]   ;;  %s166_s0 = inlined_call_operand.vmem [shape: bf16[16,32], index: 0, kind: input, shape index: {}]   ;;  %s167_s2 = inlined_call_operand.<no memory space> [shape: f32[1], index: 2, kind: input, shape index: {}]   ;;  %s168_s3 = inlined_call_operand.vmem [shape: bf16[16,1], index: 3, kind: output, shape index: {}]  }
   0x1   :  { %112 = vmatprep.subr.bf16.mxu0 %v125_v0  ;;  %v122_v1 = vld [vmem:[%s165_s1] sm:$0xff]   ;;  %116 = vmatprep.mubr.msk.bf16.mxu0 %vm126_vm0, %v125_v0  ;;  %v123_v2 = vld [vmem:[%s165_s1 + $0x8] sm:$0xff]   ;;  %v23_v4 = vstv %s167_s2 }
   0x2   :  { %113 = vmatpush3.bf16.msra.mxu0 %v122_v1  ;;  %v124_v3 = vld [vmem:[%s166_s0] sm:$0xff]  }
   0x3   :  { %114 = vmatprep.subr.bf16.mxu0 %v125_v0 }
   0x6   :  { %115 = vmatpush3.bf16.msra.mxu0 %v123_v2 }
   0x9   :  { %117 = vmatmul.mubr.msk.bf16.vlgmr.msra.gmra.mrb[0].mxu0 %vm41_vm1, %v124_v3 }
  0xdc   :  { %v79_v5 = vpop.f32.mrb[0].mxu0 }
  0xdd   :  { %v80_v6 = vadd.f32 %v79_v5, %v23_v4  ;;  %v118_v7 = vpop.f32.mrb[1].mxu0 }
  0xde   :  { %v82_v8 = vpop.f32.mrb[2].mxu0 }
  0xdf   :  { %v107_v9 = vpack.c.bf16 %v80_v6, %v80_v6  ;;  %v83_v10 = vadd.f32 %v82_v8, %v23_v4  ;;  %v119_v11 = vpop.f32.mrb[3].mxu0 }
  0xe1   :  { %95 = vst.msk [vmem:[%s168_s3] sm:$0xf] %vm94_vm2, %v107_v9  ;;  %v108_v12 = vpack.c.bf16 %v83_v10, %v83_v10 }
  0xe3   :  { %96 = vst.msk [vmem:[%s168_s3 + $0x4] sm:$0xf] %vm94_vm2, %v108_v12 }

</bundles_post_ra>
